<compile_context>
chip_gen: v5e
topology: v5e:2x2
jax: 0.10.0
libtpu: 0.0.40
codegen_flags: <defaults>
</compile_context>

<pallas_src>
import functools

import jax
import jax.numpy as jnp
from jax.experimental import pallas as pl
from jax.experimental.pallas import tpu as pltpu


def _round_up(n, m):
    return ((n + m - 1) // m) * m


def _vmem_cap_bytes():
    """~75% of physical VMEM (generation-aware): ~48 MiB v7x, ~96 MiB v5e/v6e."""
    try:
        cap = int(pltpu.get_tpu_info().vmem_capacity_bytes)
    except Exception:  # conservative fallback if the query is unavailable
        cap = 64 * 1024 * 1024
    return int(cap * 3 // 4)


def res_layer_kernel(x_ref, w1_ref, b1_ref, w2_ref, b2_ref, o_ref):
    x = x_ref[...]
    # Linear 1 + ReLU  (MXU matmul, f32 accumulate; bias/ReLU on VPU in f32)
    h = jnp.dot(x, w1_ref[...], preferred_element_type=jnp.float32) + b1_ref[...]
    h = jnp.maximum(h, 0.0)
    # Linear 2 + ReLU
    y = jnp.dot(h.astype(w2_ref.dtype), w2_ref[...],
                preferred_element_type=jnp.float32) + b2_ref[...]
    y = jnp.maximum(y, 0.0)
    # residual add in f32, single final cast
    o_ref[...] = (y + x.astype(jnp.float32)).astype(o_ref.dtype)


@functools.partial(jax.jit, static_argnames=("block_rows",))
def res_layer(x, w1, b1, w2, b2, *, block_rows=None):
    """y = ReLU(ReLU(x @ w1 + b1) @ w2 + b2) + x.

    x: [..., D]; w1, w2: [D, D] (torch (out,in) weights stored transposed as
    (in,out)); b1, b2: [D].  Residual add requires in_dim == out_dim.
    """
    orig_shape = x.shape
    D = orig_shape[-1]
    assert w1.shape == (D, D) and w2.shape == (D, D), \
        "ResLayer residual add requires in_dim == out_dim"

    x2 = x.reshape(-1, D)          # flatten leading dims -> [B, D]
    B = x2.shape[0]

    # ---- small-D lane packing (no feature-dim zero padding) ------------------
    # Fold k = 128 // D logical rows into a single 128-lane row; the weights
    # become block-diagonal (k copies of W on the diagonal), biases are tiled.
    # Each packed row computes k independent rows of x @ W exactly.
    if D < 128 and 128 % D == 0:
        k = 128 // D
    else:
        k = 1

    if k > 1:
        Dk = k * D                                  # = 128, lane-dense
        Br = _round_up(B, k)
        if Br != B:
            x2 = jnp.pad(x2, ((0, Br - B), (0, 0)))  # cheap row pad only
        xk = x2.reshape(Br // k, Dk)                # pure reshape, no feature pad
        eye = jnp.eye(k, dtype=w1.dtype)
        w1k = jnp.kron(eye, w1)                     # block-diagonal (Dk, Dk)
        w2k = jnp.kron(eye, w2)
        b1k = jnp.tile(b1, k).reshape(1, Dk)
        b2k = jnp.tile(b2, k).reshape(1, Dk)
    else:
        # Feature dim used at its true extent (full-extent last block dim is
        # legal); stores are masked only when D is not a multiple of 128.
        Dk = D
        xk = x2
        w1k, w2k = w1, w2
        b1k, b2k = b1.reshape(1, D), b2.reshape(1, D)

    Bk = xk.shape[0]

    # ---- batch tiling ---------------------------------------------------------
    if block_rows is not None:
        tm_target = max(8, _round_up(block_rows, 8))
    else:
        # Each grid step should move >= ~2 MiB per stream to amortize the
        # ~0.35us fixed per-step cost (=> TM ~2048-4096 at Dk=128).
        tm_target = max(512, _round_up((2 * 1024 * 1024) // (4 * Dk), 256))

    if Bk > tm_target:
        grid = int(pl.cdiv(Bk, tm_target))
    elif Bk >= 512:
        grid = 2                    # enough work: let ("parallel",) use 2 TCs on v7x
    else:
        grid = 1

    if grid == 1:
        TM, Bp = Bk, Bk             # full-extent row block (legal for any Bk)
    else:
        TM = _round_up(int(pl.cdiv(Bk, grid)), 8)   # row pad bounded by 8*grid
        Bp = grid * TM
        if Bp > Bk:
            xk = jnp.pad(xk, ((0, Bp - Bk), (0, 0)))

    # ---- VMEM budget ----------------------------------------------------------
    # W1/W2/biases single-buffered (constant index_map), x/out double-buffered,
    # plus f32 temporaries; 1.5x headroom, capped at ~75% of physical VMEM.
    # TODO(synk): for large D (two resident f32 DxD weights exceed the VMEM
    # budget, D ~> 1.5-2K), add an output-column grid axis and stream W1/W2 as
    # (Dk, tn) tiles with an f32 accumulator; optionally cast weights/operands
    # to bf16 (keeping f32 accumulation + f32 bias/ReLU/residual) once MXU-bound.
    itemsize = 4
    need = itemsize * (2 * Dk * Dk          # W1, W2 (single-buffered)
                       + 2 * Dk             # biases (single-buffered)
                       + 2 * 2 * TM * Dk    # x / out tiles (double-buffered)
                       + 3 * TM * Dk)       # f32 temporaries
    vmem_limit = int(min(max(need * 1.5, 16 * 1024 * 1024), _vmem_cap_bytes()))

    const = pl.Buffered(1)
    out = pl.pallas_call(
        res_layer_kernel,
        out_shape=jax.ShapeDtypeStruct((Bp, Dk), x.dtype),
        grid=(grid,),
        in_specs=[
            pl.BlockSpec((TM, Dk), lambda i: (i, 0)),                       # x tile (pipelined)
            pl.BlockSpec((Dk, Dk), lambda i: (0, 0), pipeline_mode=const),  # W1 (resident, 1 buf)
            pl.BlockSpec((1, Dk), lambda i: (0, 0), pipeline_mode=const),   # b1
            pl.BlockSpec((Dk, Dk), lambda i: (0, 0), pipeline_mode=const),  # W2 (resident, 1 buf)
            pl.BlockSpec((1, Dk), lambda i: (0, 0), pipeline_mode=const),   # b2
        ],
        out_specs=pl.BlockSpec((TM, Dk), lambda i: (i, 0)),
        compiler_params=pltpu.CompilerParams(
            dimension_semantics=("parallel",),
            vmem_limit_bytes=vmem_limit),
    )(xk, w1k, b1k, w2k, b2k)

    # ---- unpack (slices/reshapes are no-ops when no padding was needed) -------
    out = out[:Bk]
    if k > 1:
        out = out.reshape(Bk * k, D)
    return out[:B].reshape(orig_shape)


def _ref(x, w1, b1, w2, b2):
    h = jnp.maximum(x @ w1 + b1, 0.0)
    y = jnp.maximum(h @ w2 + b2, 0.0)
    return y + x


if __name__ == "__main__":
    # ResLayer(in_dim=32, out_dim=32); input x: [batch=8, dim=32]
    in_dim = out_dim = 32
    batch = 8

    key = jax.random.PRNGKey(0)
    kx, kw1, kb1, kw2, kb2 = jax.random.split(key, 5)

    x = jax.random.normal(kx, (batch, in_dim), dtype=jnp.float32)

    # Deterministic parameter init (uniform like torch's default, but synthetic)
    bound1 = 1.0 / (in_dim ** 0.5)
    bound2 = 1.0 / (out_dim ** 0.5)
    # stored as (in_dim, out_dim) == torch weight (out, in) transposed
    w1 = jax.random.uniform(kw1, (in_dim, out_dim), jnp.float32, -bound1, bound1)
    b1 = jax.random.uniform(kb1, (out_dim,), jnp.float32, -bound1, bound1)
    w2 = jax.random.uniform(kw2, (out_dim, out_dim), jnp.float32, -bound2, bound2)
    b2 = jax.random.uniform(kb2, (out_dim,), jnp.float32, -bound2, bound2)

    out = res_layer(x, w1, b1, w2, b2)
    jax.block_until_ready(out)

    ref = _ref(x, w1, b1, w2, b2)
    assert out.shape == x.shape
    assert jnp.allclose(out, ref, atol=1e-5, rtol=1e-5), "mismatch vs JAX reference"

    print("KERNEL_OK")
</pallas_src>

<mosaic_0001>
module attributes {stable_mosaic.version = 11 : i64} {
  func.func @res_layer_kernel(%arg0: i32, %arg1: memref<2x128xf32, #tpu.memory_space<vmem>>, %arg2: memref<128x128xf32, #tpu.memory_space<vmem>>, %arg3: memref<1x128xf32, #tpu.memory_space<vmem>>, %arg4: memref<128x128xf32, #tpu.memory_space<vmem>>, %arg5: memref<1x128xf32, #tpu.memory_space<vmem>>, %arg6: memref<2x128xf32, #tpu.memory_space<vmem>>) attributes {dimension_semantics = [#tpu.dimension_semantics<parallel>], iteration_bounds = array<i64: 1>, scalar_prefetch = 0 : i64, scratch_operands = 0 : i64, tpu.core_type = #tpu.core_type<tc>, window_params = [{transform_indices = @transform_0, window_bounds = array<i64: 2, 128>}, {pipeline_mode = #tpu.pipeline_mode<synchronous>, transform_indices = @transform_1, window_bounds = array<i64: 128, 128>}, {pipeline_mode = #tpu.pipeline_mode<synchronous>, transform_indices = @transform_2, window_bounds = array<i64: 1, 128>}, {pipeline_mode = #tpu.pipeline_mode<synchronous>, transform_indices = @transform_3, window_bounds = array<i64: 128, 128>}, {pipeline_mode = #tpu.pipeline_mode<synchronous>, transform_indices = @transform_4, window_bounds = array<i64: 1, 128>}, {transform_indices = @transform_5, window_bounds = array<i64: 2, 128>}]} {
    %c0 = arith.constant 0 : index
    %c0_0 = arith.constant 0 : index
    %0 = vector.load %arg1[%c0, %c0_0] : memref<2x128xf32, #tpu.memory_space<vmem>>, vector<2x128xf32>
    %c0_1 = arith.constant 0 : index
    %c0_2 = arith.constant 0 : index
    %1 = vector.load %arg2[%c0_1, %c0_2] : memref<128x128xf32, #tpu.memory_space<vmem>>, vector<128x128xf32>
    %cst = arith.constant dense<0.000000e+00> : vector<2x128xf32>
    %2 = tpu.matmul %0, %1, %cst {dimension_numbers = #tpu.dot_dimension_numbers<[1], [0], [0], [1], [0, 0, 1, 1], [], []>} : vector<2x128xf32>, vector<128x128xf32>, vector<2x128xf32> -> vector<2x128xf32>
    %c0_3 = arith.constant 0 : index
    %c0_4 = arith.constant 0 : index
    %3 = vector.load %arg3[%c0_3, %c0_4] : memref<1x128xf32, #tpu.memory_space<vmem>>, vector<1x128xf32>
    %4 = vector.broadcast %3 : vector<1x128xf32> to vector<2x128xf32>
    %5 = arith.addf %2, %4 : vector<2x128xf32>
    %cst_5 = arith.constant 0.000000e+00 : f32
    %6 = vector.broadcast %cst_5 : f32 to vector<2x128xf32>
    %7 = arith.maximumf %5, %6 : vector<2x128xf32>
    %c0_6 = arith.constant 0 : index
    %c0_7 = arith.constant 0 : index
    %8 = vector.load %arg4[%c0_6, %c0_7] : memref<128x128xf32, #tpu.memory_space<vmem>>, vector<128x128xf32>
    %cst_8 = arith.constant dense<0.000000e+00> : vector<2x128xf32>
    %9 = tpu.matmul %7, %8, %cst_8 {dimension_numbers = #tpu.dot_dimension_numbers<[1], [0], [0], [1], [0, 0, 1, 1], [], []>} : vector<2x128xf32>, vector<128x128xf32>, vector<2x128xf32> -> vector<2x128xf32>
    %c0_9 = arith.constant 0 : index
    %c0_10 = arith.constant 0 : index
    %10 = vector.load %arg5[%c0_9, %c0_10] : memref<1x128xf32, #tpu.memory_space<vmem>>, vector<1x128xf32>
    %11 = vector.broadcast %10 : vector<1x128xf32> to vector<2x128xf32>
    %12 = arith.addf %9, %11 : vector<2x128xf32>
    %cst_11 = arith.constant 0.000000e+00 : f32
    %13 = vector.broadcast %cst_11 : f32 to vector<2x128xf32>
    %14 = arith.maximumf %12, %13 : vector<2x128xf32>
    %15 = arith.addf %14, %0 : vector<2x128xf32>
    %c0_12 = arith.constant 0 : index
    %c0_13 = arith.constant 0 : index
    %16 = vector.load %arg6[%c0_12, %c0_13] : memref<2x128xf32, #tpu.memory_space<vmem>>, vector<2x128xf32>
    tpu.vector_store %arg6[%c0_12, %c0_13], %15 {strides = array<i32>} : memref<2x128xf32, #tpu.memory_space<vmem>>, vector<2x128xf32>,
    return
  }
  func.func @transform_0(%arg0: i32) -> (i32, i32) {
    %c0_i32 = arith.constant 0 : i32
    %c0_i32_0 = arith.constant 0 : i32
    return %arg0, %c0_i32 : i32, i32
  }
  func.func @transform_1(%arg0: i32) -> (i32, i32) {
    %c0_i32 = arith.constant 0 : i32
    %c0_i32_0 = arith.constant 0 : i32
    %c0_i32_1 = arith.constant 0 : i32
    return %c0_i32, %c0_i32_0 : i32, i32
  }
  func.func @transform_2(%arg0: i32) -> (i32, i32) {
    %c0_i32 = arith.constant 0 : i32
    %c0_i32_0 = arith.constant 0 : i32
    %c0_i32_1 = arith.constant 0 : i32
    return %c0_i32, %c0_i32_0 : i32, i32
  }
  func.func @transform_3(%arg0: i32) -> (i32, i32) {
    %c0_i32 = arith.constant 0 : i32
    %c0_i32_0 = arith.constant 0 : i32
    %c0_i32_1 = arith.constant 0 : i32
    return %c0_i32, %c0_i32_0 : i32, i32
  }
  func.func @transform_4(%arg0: i32) -> (i32, i32) {
    %c0_i32 = arith.constant 0 : i32
    %c0_i32_0 = arith.constant 0 : i32
    %c0_i32_1 = arith.constant 0 : i32
    return %c0_i32, %c0_i32_0 : i32, i32
  }
  func.func @transform_5(%arg0: i32) -> (i32, i32) {
    %c0_i32 = arith.constant 0 : i32
    %c0_i32_0 = arith.constant 0 : i32
    return %arg0, %c0_i32 : i32, i32
  }
}

</mosaic_0001>

<bundles_post_ra>
// kernel: tile.13
= control target key start
LH: loop header
LB: loop body
LE: loop exit
PB: predicated region body
PF: predicated region fallthrough
CT: control target
= control target key end

     0   :  { %s22_s0 = inlined_call_operand.vmem [shape: f32[32], index: 0, kind: input, shape index: {}]   ;;  %s23_s1 = inlined_call_operand.vmem [shape: f32[4,32], index: 1, kind: output, shape index: {}]  }
   0x1   :  { %v4_v0 = vld [vmem:[%s22_s0] ss:$0 sm:$0xff] }
   0x2   :  { %5 = vst [vmem:[%s23_s1] sm:$0xf] %v4_v0 }

// kernel: tile.14
= control target key start
LH: loop header
LB: loop body
LE: loop exit
PB: predicated region body
PF: predicated region fallthrough
CT: control target
= control target key end

     0   :  { %s37_s8 = smov 32   ;;  %s38_s9 = smov 64   ;;  %vm7_vm0 = vcmask 261120   ;;  %vm13_vm1 = vcmask 1048320   ;;  %vm19_vm2 = vcmask 785920   ;;  %vm25_vm3 = vcmask 523520   ;;  %s55_s0 = inlined_call_operand.vmem [shape: f32[4,32], index: 0, kind: input, shape index: {}]   ;;  %s56_s1 = inlined_call_operand.vmem [shape: f32[1,128], index: 1, kind: output, shape index: {}]  }
   0x1   :  { %v4_v0 = vld [vmem:[%s55_s0] sm:$0xf]  ;;  %s36_s0 = smov 96  }
   0x2   :  { %5 = vst [vmem:[#allocation1] sm:$0xf] %v4_v0 }
   0x9   :  { %v10_v1 = vld [vmem:[#allocation1 + $0x3] sm:$0x1]   ;;  %v22_v2 = vld [vmem:[#allocation1 + $0x1] sm:$0x1]   ;;  %v16_v3 = vld [vmem:[#allocation1 + $0x2] sm:$0x1]  }
   0xa   :  { %11 = vrot.lane.b32.xlu0 %v10_v1, %s36_s0  ;;  %23 = vrot.lane.b32.xlu1 %v22_v2, %s37_s8  ;;  %v6_v4 = vld [vmem:[#allocation1] sm:$0x1]  }
   0xb   :  { %8 = vst.msk [vmem:[#allocation0] sm:$0x1] %vm7_vm0, %v6_v4  }
  0x12   :  { %17 = vrot.lane.b32.xlu0 %v16_v3, %s38_s9 }
  0x7c   :  { %v12_v5 = vpop.permute.xlu0 %11   ;;  %v24_v6 = vpop.permute.xlu1 %23  }
  0x7d   :  { %14 = vst.msk [vmem:[#allocation0] sm:$0x1] %vm13_vm1, %v12_v5  }
  0x84   :  { %v18_v7 = vpop.permute.xlu0 %17  }
  0x85   :  { %20 = vst.msk [vmem:[#allocation0] sm:$0x1] %vm19_vm2, %v18_v7  }
  0x86   :  { %26 = vst.msk [vmem:[#allocation0] sm:$0x1] %vm25_vm3, %v24_v6  }
  0x8d   :  { %v29_v8 = vld [vmem:[#allocation0] sm:$0x1] }
  0x8e   :  { %32 = vst [vmem:[%s56_s1] sm:$0x1] %v29_v8 }

// kernel: res_layer.1
= control target key start
LH: loop header
LB: loop body
LE: loop exit
PB: predicated region body
PF: predicated region fallthrough
CT: control target
= control target key end

     0   :  { %s249_s1 = inlined_call_operand.vmem [shape: f32[128,128], index: 1, kind: input, shape index: {}]   ;;  %s250_s3 = inlined_call_operand.vmem [shape: f32[128,128], index: 3, kind: input, shape index: {}]   ;;  %s251_s2 = inlined_call_operand.vmem [shape: f32[1,128], index: 2, kind: input, shape index: {}]   ;;  %s252_s0 = inlined_call_operand.vmem [shape: f32[2,128], index: 0, kind: input, shape index: {}]   ;;  %s253_s4 = inlined_call_operand.vmem [shape: f32[1,128], index: 4, kind: input, shape index: {}]   ;;  %s254_s5 = inlined_call_operand.vmem [shape: f32[2,128], index: 5, kind: output, shape index: {}]  }
   0x1   :  { %v36_v0 = vld [vmem:[%s249_s1 + $0x78] sm:$0xff]  ;;  %v35_v1 = vld [vmem:[%s249_s1 + $0x70] sm:$0xff]  ;;  %v34_v2 = vld [vmem:[%s249_s1 + $0x68] sm:$0xff] }
   0x2   :  { %41 = vmatpush.msra.mxu0 %v36_v0  ;;  %v33_v3 = vld [vmem:[%s249_s1 + $0x60] sm:$0xff]  ;;  %v77_v4 = vld [vmem:[%s250_s3 + $0x78] sm:$0xff]  ;;  %v76_v6 = vld [vmem:[%s250_s3 + $0x70] sm:$0xff] }
   0x3   :  { %v32_v5 = vld [vmem:[%s249_s1 + $0x58] sm:$0xff]  ;;  %82 = vmatpush.msra.mxu1 %v77_v4  ;;  %v75_v7 = vld [vmem:[%s250_s3 + $0x68] sm:$0xff]  ;;  %v31_v8 = vld [vmem:[%s249_s1 + $0x50] sm:$0xff] }
   0x4   :  { %42 = vmatpush.msra.mxu0 %v35_v1  ;;  %v74_v9 = vld [vmem:[%s250_s3 + $0x60] sm:$0xff]  ;;  %v30_v10 = vld [vmem:[%s249_s1 + $0x48] sm:$0xff]  ;;  %v73_v11 = vld [vmem:[%s250_s3 + $0x58] sm:$0xff] }
   0x5   :  { %83 = vmatpush.msra.mxu1 %v76_v6  ;;  %v29_v12 = vld [vmem:[%s249_s1 + $0x40] sm:$0xff]  ;;  %v72_v13 = vld [vmem:[%s250_s3 + $0x50] sm:$0xff]  ;;  %v28_v14 = vld [vmem:[%s249_s1 + $0x38] sm:$0xff] }
   0x6   :  { %43 = vmatpush.msra.mxu0 %v34_v2  ;;  %v71_v15 = vld [vmem:[%s250_s3 + $0x48] sm:$0xff]  ;;  %v27_v16 = vld [vmem:[%s249_s1 + $0x30] sm:$0xff]  ;;  %v70_v17 = vld [vmem:[%s250_s3 + $0x40] sm:$0xff] }
   0x7   :  { %84 = vmatpush.msra.mxu1 %v75_v7  ;;  %v26_v18 = vld [vmem:[%s249_s1 + $0x28] sm:$0xff]  ;;  %v69_v19 = vld [vmem:[%s250_s3 + $0x38] sm:$0xff]  ;;  %v25_v20 = vld [vmem:[%s249_s1 + $0x20] sm:$0xff] }
   0x8   :  { %44 = vmatpush.msra.mxu0 %v33_v3  ;;  %v68_v21 = vld [vmem:[%s250_s3 + $0x30] sm:$0xff]  ;;  %v24_v22 = vld [vmem:[%s249_s1 + $0x18] sm:$0xff]  ;;  %v67_v23 = vld [vmem:[%s250_s3 + $0x28] sm:$0xff] }
   0x9   :  { %85 = vmatpush.msra.mxu1 %v74_v9  ;;  %v23_v24 = vld [vmem:[%s249_s1 + $0x10] sm:$0xff]  ;;  %v66_v25 = vld [vmem:[%s250_s3 + $0x20] sm:$0xff]  ;;  %v22_v26 = vld [vmem:[%s249_s1 + $0x8] sm:$0xff] }
   0xa   :  { %45 = vmatpush.msra.mxu0 %v32_v5  ;;  %v65_v27 = vld [vmem:[%s250_s3 + $0x18] sm:$0xff]  ;;  %v21_v28 = vld [vmem:[%s249_s1] sm:$0xff]  ;;  %v64_v30 = vld [vmem:[%s250_s3 + $0x10] sm:$0xff] }
   0xb   :  { %86 = vmatpush.msra.mxu1 %v73_v11  ;;  %v20_v29 = vld [vmem:[%s252_s0] sm:$0x3]  ;;  %v63_v31 = vld [vmem:[%s250_s3 + $0x8] sm:$0xff] }
   0xc   :  { %46 = vmatpush.msra.mxu0 %v31_v8  ;;  %v62_v32 = vld [vmem:[%s250_s3] sm:$0xff] }
   0xd   :  { %87 = vmatpush.msra.mxu1 %v72_v13  ;;  %v109_v33 = vld [vmem:[%s251_s2] ss:$0 sm:$0xff] }
   0xe   :  { %47 = vmatpush.msra.mxu0 %v30_v10  ;;  %v110_v37 = vld [vmem:[%s253_s4] ss:$0 sm:$0xff] }
   0xf   :  { %88 = vmatpush.msra.mxu1 %v71_v15 }
  0x10   :  { %48 = vmatpush.msra.mxu0 %v29_v12 }
  0x11   :  { %89 = vmatpush.msra.mxu1 %v70_v17 }
  0x12   :  { %49 = vmatpush.msra.mxu0 %v28_v14 }
  0x13   :  { %90 = vmatpush.msra.mxu1 %v69_v19 }
  0x14   :  { %50 = vmatpush.msra.mxu0 %v27_v16 }
  0x15   :  { %91 = vmatpush.msra.mxu1 %v68_v21 }
  0x16   :  { %51 = vmatpush.msra.mxu0 %v26_v18 }
  0x17   :  { %92 = vmatpush.msra.mxu1 %v67_v23 }
  0x18   :  { %52 = vmatpush.msra.mxu0 %v25_v20 }
  0x19   :  { %93 = vmatpush.msra.mxu1 %v66_v25 }
  0x1a   :  { %53 = vmatpush.msra.mxu0 %v24_v22 }
  0x1b   :  { %94 = vmatpush.msra.mxu1 %v65_v27 }
  0x1c   :  { %54 = vmatpush.msra.mxu0 %v23_v24 }
  0x1d   :  { %95 = vmatpush.msra.mxu1 %v64_v30 }
  0x1e   :  { %55 = vmatpush.msra.mxu0 %v22_v26 }
  0x1f   :  { %96 = vmatpush.msra.mxu1 %v63_v31 }
  0x20   :  { %56 = vmatpush.msra.mxu0 %v21_v28 }
  0x21   :  { %57 = vmatmul.f32.vlgmr.msra.gmra.mxu0 %v20_v29  ;;  %97 = vmatpush.msra.mxu1 %v62_v32 }
  0x9e   :  { %v58_v34 = vpop.f32.mrf.mxu0 }
  0x9f   :  { %v59_v35 = vadd.f32 %v109_v33, %v58_v34 }
  0xa1   :  { %v61_v36 = vmax.f32 %v59_v35, 0.0 }
  0xa3   :  { %98 = vmatmul.f32.vlgmr.msra.gmra.mxu1 %v61_v36 }
 0x120   :  { %v99_v38 = vpop.f32.mrf.mxu1 }
 0x121   :  { %v100_v39 = vadd.f32 %v110_v37, %v99_v38 }
 0x123   :  { %v102_v40 = vmax.f32 %v100_v39, 0.0 }
 0x125   :  { %v103_v41 = vadd.f32 %v102_v40, %v20_v29 }
 0x127   :  { %104 = vst [vmem:[%s254_s5] sm:$0x3] %v103_v41 }

</bundles_post_ra>
